<compile_context>
chip_gen: v6e
topology: v6e:2x2x1
jax: 0.10.0
libtpu: 0.0.40
codegen_flags: <defaults>
</compile_context>

<pallas_src>
import functools

import jax
import jax.numpy as jnp
from jax.experimental import pallas as pl
from jax.experimental.pallas import tpu as pltpu

C_STEM = 32       # regnet_x_400mf stem width
C_FEAT = 400      # trunk output channels (input_dim of fc_head)
C_PAD = 512       # 400 padded to a lane-dense multiple of 128
K_RAW = 27        # 3*3*3 im2col contraction
K_PAD = 32        # padded contraction dim
N_CLS = 2
TILE_CAP = 16384  # max spatial rows per block: 16384*32*2B = 1 MiB (2 MiB double-buffered)


def _round_up(x, m):
    return (x + m - 1) // m * m


# ----------------------------- Pallas kernel ------------------------------- #

def _fused_feature_kernel(p_ref, ws_ref, bs_ref, wp_ref, o_ref, *, inv_s, s_total):
    """stem conv (im2col matmul, folded BN) + ReLU -> 1x1 proj + ReLU -> avg pool.

    p_ref : (TILE_S, K_PAD) bf16  im2col patches for one (batch, spatial-tile) block
    ws_ref: (K_PAD, C_STEM) bf16  stem weight (BN scale folded in, resident)
    bs_ref: (1, C_STEM)     f32   stem bias (folded BN shift, resident)
    wp_ref: (C_STEM, C_PAD) bf16  trunk-approx 1x1 conv weight (resident)
    o_ref : (1, C_PAD)      f32   per-batch pooled features (resident accumulator)
    """
    s = pl.program_id(1)

    @pl.when(s == 0)
    def _init():
        o_ref[...] = jnp.zeros_like(o_ref)

    tile_s = p_ref.shape[0]
    x = p_ref[...]                                                  # (tile_s, 32) bf16

    # stem: conv3x3/s2 as matmul + folded BN + ReLU (f32 MXU accumulation)
    h = jnp.dot(x, ws_ref[...], preferred_element_type=jnp.float32)
    h = jnp.maximum(h + bs_ref[...], 0.0)

    # trunk approximation: 1x1 conv 32 -> 512(=400 zero-padded) + ReLU
    y = jnp.dot(h.astype(jnp.bfloat16), wp_ref[...],
                preferred_element_type=jnp.float32)
    y = jnp.maximum(y, 0.0)

    # Mask tail rows of the last (partial) spatial tile so padded patch rows
    # never pollute the global average pool. Emitted only when needed (static).
    if s_total % tile_s != 0:
        row = jax.lax.broadcasted_iota(jnp.int32, (tile_s, 1), 0) + s * tile_s
        y = jnp.where(row < s_total, y, 0.0)

    # partial global average pool: row-sum of this spatial tile, accumulated
    # directly into the resident output block (no scratch).
    o_ref[...] += y.sum(axis=0, keepdims=True)

    @pl.when(s == pl.num_programs(1) - 1)
    def _finalize():
        o_ref[...] *= inv_s


# ------------------------------ JAX glue ----------------------------------- #

def _im2col_padded(x_nhwc, k=3, stride=2, pad=1):
    """im2col in bf16 -> (B, Ho*Wo, K_PAD), built at K_PAD width in one concat."""
    B, H, W, C = x_nhwc.shape
    xp = jnp.pad(x_nhwc, ((0, 0), (pad, pad), (pad, pad), (0, 0)))
    Ho = (H + 2 * pad - k) // stride + 1
    Wo = (W + 2 * pad - k) // stride + 1
    cols = []
    for i in range(k):
        for j in range(k):
            cols.append(xp[:, i:i + stride * Ho:stride, j:j + stride * Wo:stride, :])
    cols.append(jnp.zeros((B, Ho, Wo, K_PAD - k * k * C), x_nhwc.dtype))
    patches = jnp.concatenate(cols, axis=-1).reshape(B, Ho * Wo, K_PAD)
    return patches, Ho, Wo


@jax.jit
def classifer_forward(images_nchw, params):
    B = images_nchw.shape[0]
    # NCHW -> NHWC; cast to bf16 early so the patch tensor is half-size in HBM
    x = jnp.transpose(images_nchw, (0, 2, 3, 1)).astype(jnp.bfloat16)
    patches, Ho, Wo = _im2col_padded(x)                              # (B, S, K_PAD) bf16
    S = Ho * Wo

    # Biggest spatial tile that fits the VMEM budget: full S rounded up to 16
    # (bf16 sublane packing), capped so a block stays ~1 MiB. No divisibility
    # requirement: grid uses cdiv and the kernel masks tail rows.
    tile_s = min(_round_up(S, 16), TILE_CAP)
    n_s = pl.cdiv(S, tile_s)

    pooled = pl.pallas_call(
        functools.partial(_fused_feature_kernel, inv_s=1.0 / S, s_total=S),
        out_shape=jax.ShapeDtypeStruct((B, 1, C_PAD), jnp.float32),
        grid=(B, n_s),
        in_specs=[
            # streamed patch tiles: batch dim squeezed -> 2-D (tile_s, K_PAD) block
            pl.BlockSpec((None, tile_s, K_PAD), lambda b, s: (b, s, 0)),
            pl.BlockSpec((K_PAD, C_STEM), lambda b, s: (0, 0)),      # resident weights
            pl.BlockSpec((1, C_STEM), lambda b, s: (0, 0)),
            pl.BlockSpec((C_STEM, C_PAD), lambda b, s: (0, 0)),
        ],
        # per-batch resident output block (lane-dense 512-wide f32 accumulator)
        out_specs=pl.BlockSpec((None, 1, C_PAD), lambda b, s: (b, 0, 0)),
        compiler_params=pltpu.CompilerParams(
            dimension_semantics=("parallel", "arbitrary"),  # batch parallel (v7x 2 TCs),
            vmem_limit_bytes=32 * 1024 * 1024,              # spatial axis is the reduction
        ),
    )(patches, params["w_stem"], params["b_stem"], params["w_proj"])

    # fc_head Linear(400, 2): tiny GEMV, kept out of the Pallas hot path
    feats = pooled[:, 0, :C_FEAT]
    return jnp.dot(feats, params["w_fc"]) + params["b_fc"]          # (B, 2) f32


def init_params(key):
    k1, k2, k3, k4 = jax.random.split(key, 4)
    k, cin = 3, 3

    # stem Conv2d(3, 32, 3, stride=2, pad=1, bias=False): PyTorch default kaiming bound
    fan_in = cin * k * k
    bound = 1.0 / jnp.sqrt(fan_in)
    w_stem = jax.random.uniform(k1, (k * k * cin, C_STEM), jnp.float32, -bound, bound)

    # BatchNorm (eval mode, fresh init: gamma=1, beta=0, mean=0, var=1) folded into conv
    eps = 1e-5
    bn_scale = jnp.ones((C_STEM,), jnp.float32) / jnp.sqrt(1.0 + eps)
    bn_shift = jnp.zeros((C_STEM,), jnp.float32)
    w_stem = w_stem * bn_scale[None, :]                              # fold scale into columns
    b_stem = bn_shift.reshape(1, C_STEM)                             # folded shift as bias
    w_stem = jnp.pad(w_stem, ((0, K_PAD - k * k * cin), (0, 0))).astype(jnp.bfloat16)

    # trunk approximation: 1x1 conv 32 -> 400, zero-padded to 512 output channels
    w_proj = jax.random.uniform(k2, (C_STEM, C_FEAT), jnp.float32,
                                -1.0 / jnp.sqrt(C_STEM), 1.0 / jnp.sqrt(C_STEM))
    w_proj = jnp.pad(w_proj, ((0, 0), (0, C_PAD - C_FEAT))).astype(jnp.bfloat16)

    # fc_head: Linear(400, 2) with xavier_uniform weight, PyTorch-default uniform bias
    xav = jnp.sqrt(6.0 / (C_FEAT + N_CLS))
    w_fc = jax.random.uniform(k3, (C_FEAT, N_CLS), jnp.float32, -xav, xav)
    b_fc = jax.random.uniform(k4, (1, N_CLS), jnp.float32,
                              -1.0 / jnp.sqrt(C_FEAT), 1.0 / jnp.sqrt(C_FEAT))
    return dict(w_stem=w_stem, b_stem=b_stem, w_proj=w_proj, w_fc=w_fc, b_fc=b_fc)


if __name__ == "__main__":
    key = jax.random.PRNGKey(0)
    k_img, k_par = jax.random.split(key)
    images = jax.random.normal(k_img, (2, 3, 32, 32), jnp.float32)   # NCHW, like PyTorch
    params = init_params(k_par)

    logits = classifer_forward(images, params)
    jax.block_until_ready(logits)
    assert logits.shape == (2, 2) and logits.dtype == jnp.float32
    print("KERNEL_OK")
</pallas_src>

<mosaic_0001>
module attributes {stable_mosaic.version = 11 : i64} {
  func.func @_fused_feature_kernel(%arg0: i32, %arg1: i32, %arg2: memref<1x256x32xbf16, #tpu.memory_space<vmem>>, %arg3: memref<32x32xbf16, #tpu.memory_space<vmem>>, %arg4: memref<1x32xf32, #tpu.memory_space<vmem>>, %arg5: memref<32x512xbf16, #tpu.memory_space<vmem>>, %arg6: memref<1x1x512xf32, #tpu.memory_space<vmem>>) attributes {dimension_semantics = [#tpu.dimension_semantics<parallel>, #tpu.dimension_semantics<arbitrary>], iteration_bounds = array<i64: 2, 1>, scalar_prefetch = 0 : i64, scratch_operands = 0 : i64, tpu.core_type = #tpu.core_type<tc>, window_params = [{transform_indices = @transform_0, window_bounds = array<i64: 1, 256, 32>}, {pipeline_mode = #tpu.pipeline_mode<synchronous>, transform_indices = @transform_1, window_bounds = array<i64: 32, 32>}, {pipeline_mode = #tpu.pipeline_mode<synchronous>, transform_indices = @transform_2, window_bounds = array<i64: 1, 32>}, {pipeline_mode = #tpu.pipeline_mode<synchronous>, transform_indices = @transform_3, window_bounds = array<i64: 32, 512>}, {transform_indices = @transform_4, window_bounds = array<i64: 1, 1, 512>}]} {
    %c0_i32 = arith.constant 0 : i32
    %0 = arith.cmpi eq, %arg1, %c0_i32 : i32
    %1 = arith.extui %0 : i1 to i32
    %c0_i32_0 = arith.constant 0 : i32
    %2 = arith.cmpi ne, %1, %c0_i32_0 : i32
    scf.if %2 {
      %cst_21 = arith.constant 0.000000e+00 : f32
      %28 = vector.broadcast %cst_21 : f32 to vector<1x512xf32>
      %c0_22 = arith.constant 0 : index
      %c0_23 = arith.constant 0 : index
      %c0_24 = arith.constant 0 : index
      %29 = vector.load %arg6[%c0_22, %c0_23, %c0_24] : memref<1x1x512xf32, #tpu.memory_space<vmem>>, vector<1x1x512xf32>
      %30 = vector.shape_cast %29 : vector<1x1x512xf32> to vector<1x512xf32>
      %31 = vector.shape_cast %28 : vector<1x512xf32> to vector<1x1x512xf32>
      tpu.vector_store %arg6[%c0_22, %c0_23, %c0_24], %31 {strides = array<i32>} : memref<1x1x512xf32, #tpu.memory_space<vmem>>, vector<1x1x512xf32>,
    } else {
    }
    %c0 = arith.constant 0 : index
    %c0_1 = arith.constant 0 : index
    %c0_2 = arith.constant 0 : index
    %3 = vector.load %arg2[%c0, %c0_1, %c0_2] : memref<1x256x32xbf16, #tpu.memory_space<vmem>>, vector<1x256x32xbf16>
    %4 = vector.shape_cast %3 : vector<1x256x32xbf16> to vector<256x32xbf16>
    %c0_3 = arith.constant 0 : index
    %c0_4 = arith.constant 0 : index
    %5 = vector.load %arg3[%c0_3, %c0_4] : memref<32x32xbf16, #tpu.memory_space<vmem>>, vector<32x32xbf16>
    %cst = arith.constant dense<0.000000e+00> : vector<256x32xf32>
    %6 = tpu.matmul %4, %5, %cst {dimension_numbers = #tpu.dot_dimension_numbers<[1], [0], [0], [1], [0, 0, 1, 1], [], []>} : vector<256x32xbf16>, vector<32x32xbf16>, vector<256x32xf32> -> vector<256x32xf32>
    %c0_5 = arith.constant 0 : index
    %c0_6 = arith.constant 0 : index
    %7 = vector.load %arg4[%c0_5, %c0_6] : memref<1x32xf32, #tpu.memory_space<vmem>>, vector<1x32xf32>
    %8 = vector.broadcast %7 : vector<1x32xf32> to vector<256x32xf32>
    %9 = arith.addf %6, %8 : vector<256x32xf32>
    %cst_7 = arith.constant 0.000000e+00 : f32
    %10 = vector.broadcast %cst_7 : f32 to vector<256x32xf32>
    %11 = arith.maximumf %9, %10 : vector<256x32xf32>
    %12 = arith.truncf %11 : vector<256x32xf32> to vector<256x32xbf16>
    %c0_8 = arith.constant 0 : index
    %c0_9 = arith.constant 0 : index
    %13 = vector.load %arg5[%c0_8, %c0_9] : memref<32x512xbf16, #tpu.memory_space<vmem>>, vector<32x512xbf16>
    %cst_10 = arith.constant dense<0.000000e+00> : vector<256x512xf32>
    %14 = tpu.matmul %12, %13, %cst_10 {dimension_numbers = #tpu.dot_dimension_numbers<[1], [0], [0], [1], [0, 0, 1, 1], [], []>} : vector<256x32xbf16>, vector<32x512xbf16>, vector<256x512xf32> -> vector<256x512xf32>
    %cst_11 = arith.constant 0.000000e+00 : f32
    %15 = vector.broadcast %cst_11 : f32 to vector<256x512xf32>
    %16 = arith.maximumf %14, %15 : vector<256x512xf32>
    %c0_12 = arith.constant 0 : index
    %c0_13 = arith.constant 0 : index
    %c0_14 = arith.constant 0 : index
    %17 = vector.load %arg6[%c0_12, %c0_13, %c0_14] : memref<1x1x512xf32, #tpu.memory_space<vmem>>, vector<1x1x512xf32>
    %18 = vector.shape_cast %17 : vector<1x1x512xf32> to vector<1x512xf32>
    %cst_15 = arith.constant dense<0.000000e+00> : vector<512xf32>
    %19 = vector.multi_reduction <add>, %16, %cst_15 [0] : vector<256x512xf32> to vector<512xf32>
    %20 = vector.shape_cast %19 : vector<512xf32> to vector<1x512xf32>
    %21 = arith.addf %18, %20 : vector<1x512xf32>
    %c0_16 = arith.constant 0 : index
    %c0_17 = arith.constant 0 : index
    %c0_18 = arith.constant 0 : index
    %22 = vector.load %arg6[%c0_16, %c0_17, %c0_18] : memref<1x1x512xf32, #tpu.memory_space<vmem>>, vector<1x1x512xf32>
    %23 = vector.shape_cast %22 : vector<1x1x512xf32> to vector<1x512xf32>
    %24 = vector.shape_cast %21 : vector<1x512xf32> to vector<1x1x512xf32>
    tpu.vector_store %arg6[%c0_16, %c0_17, %c0_18], %24 {strides = array<i32>} : memref<1x1x512xf32, #tpu.memory_space<vmem>>, vector<1x1x512xf32>,
    %c0_i32_19 = arith.constant 0 : i32
    %25 = arith.cmpi eq, %arg1, %c0_i32_19 : i32
    %26 = arith.extui %25 : i1 to i32
    %c0_i32_20 = arith.constant 0 : i32
    %27 = arith.cmpi ne, %26, %c0_i32_20 : i32
    scf.if %27 {
      %c0_21 = arith.constant 0 : index
      %c0_22 = arith.constant 0 : index
      %c0_23 = arith.constant 0 : index
      %28 = vector.load %arg6[%c0_21, %c0_22, %c0_23] : memref<1x1x512xf32, #tpu.memory_space<vmem>>, vector<1x1x512xf32>
      %29 = vector.shape_cast %28 : vector<1x1x512xf32> to vector<1x512xf32>
      %cst_24 = arith.constant 3.906250e-03 : f32
      %30 = vector.broadcast %cst_24 : f32 to vector<1x512xf32>
      %31 = arith.mulf %29, %30 : vector<1x512xf32>
      %c0_25 = arith.constant 0 : index
      %c0_26 = arith.constant 0 : index
      %c0_27 = arith.constant 0 : index
      %32 = vector.load %arg6[%c0_25, %c0_26, %c0_27] : memref<1x1x512xf32, #tpu.memory_space<vmem>>, vector<1x1x512xf32>
      %33 = vector.shape_cast %32 : vector<1x1x512xf32> to vector<1x512xf32>
      %34 = vector.shape_cast %31 : vector<1x512xf32> to vector<1x1x512xf32>
      tpu.vector_store %arg6[%c0_25, %c0_26, %c0_27], %34 {strides = array<i32>} : memref<1x1x512xf32, #tpu.memory_space<vmem>>, vector<1x1x512xf32>,
    } else {
    }
    return
  }
  func.func @transform_0(%arg0: i32, %arg1: i32) -> (i32, i32, i32) {
    %c0_i32 = arith.constant 0 : i32
    %c0_i32_0 = arith.constant 0 : i32
    return %arg0, %arg1, %c0_i32 : i32, i32, i32
  }
  func.func @transform_1(%arg0: i32, %arg1: i32) -> (i32, i32) {
    %c0_i32 = arith.constant 0 : i32
    %c0_i32_0 = arith.constant 0 : i32
    %c0_i32_1 = arith.constant 0 : i32
    return %c0_i32, %c0_i32_0 : i32, i32
  }
  func.func @transform_2(%arg0: i32, %arg1: i32) -> (i32, i32) {
    %c0_i32 = arith.constant 0 : i32
    %c0_i32_0 = arith.constant 0 : i32
    %c0_i32_1 = arith.constant 0 : i32
    return %c0_i32, %c0_i32_0 : i32, i32
  }
  func.func @transform_3(%arg0: i32, %arg1: i32) -> (i32, i32) {
    %c0_i32 = arith.constant 0 : i32
    %c0_i32_0 = arith.constant 0 : i32
    %c0_i32_1 = arith.constant 0 : i32
    return %c0_i32, %c0_i32_0 : i32, i32
  }
  func.func @transform_4(%arg0: i32, %arg1: i32) -> (i32, i32, i32) {
    %c0_i32 = arith.constant 0 : i32
    %c0_i32_0 = arith.constant 0 : i32
    %c0_i32_1 = arith.constant 0 : i32
    return %arg0, %c0_i32, %c0_i32_0 : i32, i32, i32
  }
}

</mosaic_0001>

<bundles_post_ra>
// kernel: classifer_forward.1
= control target key start
LH: loop header
LB: loop body
LE: loop exit
PB: predicated region body
PF: predicated region fallthrough
CT: control target
= control target key end

     0   :  { %s1747_s15 = smov 0   ;;  %s1749_s16 = smov 0   ;;  %s2286_s0 = inlined_call_operand.vmem [shape: bf16[2,256,32], index: 0, kind: input, shape index: {}]   ;;  %s2287_s1 = inlined_call_operand.vmem [shape: bf16[32,32], index: 1, kind: input, shape index: {}]   ;;  %s2288_s2 = inlined_call_operand.vmem [shape: f32[1,32], index: 2, kind: input, shape index: {}]   ;;  %s2289_s3 = inlined_call_operand.vmem [shape: bf16[32,512], index: 3, kind: input, shape index: {}]   ;;  %s2290_s4 = inlined_call_operand.vmem [shape: f32[2,1,512], index: 4, kind: output, shape index: {}]  }
   0x1   :  { %s1751_s17 = smov 0  }
   0x2 LB: > { %s26_s18 = sadd.s32 1, %s1713_s16  ;;  %p1498_p0 = scmp.ge.s32.totalorder %s1717_s17, 1  ;;  %s1717_s17 = sphi %s1751_s17, %s14_s17   ;;  %s1713_s16 = sphi %s1749_s16, %s2334_s16   ;;  %s1709_s15 = sphi %s1747_s15, %s2333_s15  }
   0x3   : > { %p28_p1 = scmp.ge.s32.totalorder %s26_s18, 2  ;;  %p181_p2 = scmp.lt.s32.totalorder %s1717_s17, 3 }
   0x5   : > { %s2336_s18 = smov (%p28_p1, %s26_s18), 0  ;;  %p182_p3 = pnand %p1498_p0, %p181_p2 }
   0x7   : > { %185 = sbr.rel (%p182_p3) target bundleno = 582 (0x246), region = 36 }
   0xc   : > { %v1665_v0 = vld [vmem:[%s2287_s1 + $0x8] sm:$0xff]   ;;  %p211_p4 = scmp.lt.s32.totalorder %s1709_s15, 1  ;;  %v1666_v1 = vld [vmem:[%s2287_s1] sm:$0xff]   ;;  %vm369_vm0 = vcmask 261120   ;;  %v1719_v26 = vmov 0  }
   0xd   : > { %1598 = vmatprep.subr.bf16.mxu0 %v1665_v0  ;;  %1634 = vmatprep.subr.bf16.mxu1 %v1665_v0  ;;  %v1685_v2 = vld [vmem:[%s2289_s3 + $0x24] ss:$16 sps:$4 sm:$0xff]   ;;  %v1686_v3 = vld [vmem:[%s2289_s3 + $0x28] ss:$16 sps:$4 sm:$0xff]   ;;  %v1688_v4 = vld [vmem:[%s2289_s3 + $0x2c] ss:$16 sps:$4 sm:$0xff]  }
   0xe   : > { %s2338_s15 = smov (!%p211_p4, %s1709_s15), 1  ;;  %1599 = vmatpush3.bf16.msra.mxu0 %v1665_v0  ;;  %1636 = vmatpush3.bf16.msra.mxu1 %v1665_v0  ;;  %v1683_v10 = vld [vmem:[%s2289_s3 + $0x20] ss:$16 sps:$4 sm:$0xff]   ;;  %v1691_v12 = vld [vmem:[%s2289_s3 + $0x4] ss:$16 sps:$4 sm:$0xff]  }
   0xf   : > { %1600 = vmatprep.subr.bf16.mxu0 %v1666_v1  ;;  %s1579_s23 = sshll.u32 %s2338_s15, 7  ;;  %1635 = vmatprep.subr.bf16.mxu1 %v1666_v1  ;;  %v1689_v15 = vld [vmem:[%s2289_s3] ss:$16 sps:$4 sm:$0xff]   ;;  %v1692_v20 = vld [vmem:[%s2289_s3 + $0x8] ss:$16 sps:$4 sm:$0xff]  }
  0x10   : > { %s1780_s28 = scalar_lea.vmem %s2286_s0, %s1579_s23  ;;  %v1694_v21 = vld [vmem:[%s2289_s3 + $0xc] ss:$16 sps:$4 sm:$0xff]   ;;  %v1840_v29 = vld [vmem:[%s2288_s2] ss:$0 sm:$0xff]  ;;  %s1501_s23 = sshll.u32 %s2338_s15, 2 }
  0x11   : > { %v1667_v5 = vld [vmem:[%s1780_s28] sm:$0xff]   ;;  %v1668_v6 = vld [vmem:[%s1780_s28 + $0x8] sm:$0xff]   ;;  %v1669_v7 = vld [vmem:[%s1780_s28 + $0x10] sm:$0xff]   ;;  %s1968_s26 = scalar_lea.vmem %s2290_s4, %s1501_s23 }
  0x12   : > { %1601 = vmatpush3.bf16.msra.mxu0 %v1666_v1  ;;  %1637 = vmatpush3.bf16.msra.mxu1 %v1666_v1  ;;  %v1670_v8 = vld [vmem:[%s1780_s28 + $0x18] sm:$0xff]   ;;  %v1671_v9 = vld [vmem:[%s1780_s28 + $0x20] sm:$0xff]   ;;  %v1676_v13 = vld [vmem:[%s1780_s28 + $0x48] sm:$0xff]  }
  0x13   : > { %1602 = vmatprep.mubr.msk.bf16.mxu0 %vm369_vm0, %v1667_v5  ;;  %735 = vmatprep.subr.bf16.mxu1 %v1685_v2  ;;  %v1675_v11 = vld [vmem:[%s1780_s28 + $0x40] sm:$0xff]   ;;  %v1677_v14 = vld [vmem:[%s1780_s28 + $0x50] sm:$0xff]   ;;  %v1672_v16 = vld [vmem:[%s1780_s28 + $0x28] sm:$0xff]  }
  0x14   : > { %928 = vmatprep.subr.bf16.mxu0 %v1688_v4  ;;  %1618 = vmatprep.mubr.msk.bf16.mxu1 %vm369_vm0, %v1675_v11  ;;  %v1678_v17 = vld [vmem:[%s1780_s28 + $0x58] sm:$0xff]   ;;  %v1679_v18 = vld [vmem:[%s1780_s28 + $0x60] sm:$0xff]   ;;  %v1673_v19 = vld [vmem:[%s1780_s28 + $0x30] sm:$0xff]  }
  0x15   : > { %1603 = vmatmul.mubr.msk.bf16.vlgmr.msra.gmra.mxu0 %vm369_vm0, %v1668_v6  ;;  %1619 = vmatmul.mubr.msk.bf16.vlgmr.msra.gmra.mxu1 %vm369_vm0, %v1676_v13  ;;  %v1680_v22 = vld [vmem:[%s1780_s28 + $0x68] sm:$0xff]   ;;  %v1674_v23 = vld [vmem:[%s1780_s28 + $0x38] sm:$0xff]   ;;  %v1681_v24 = vld [vmem:[%s1780_s28 + $0x70] sm:$0xff]  }
  0x16   : > { %1606 = vmatprep.mubr.msk.bf16.mxu0 %vm369_vm0, %v1669_v7  ;;  %929 = vmatpush1.bf16.msra.mxu0 %v1686_v3  ;;  %v1682_v25 = vld [vmem:[%s1780_s28 + $0x78] sm:$0xff]  }
  0x17   : > { %1622 = vmatprep.mubr.msk.bf16.mxu1 %vm369_vm0, %v1677_v14  ;;  %736 = vmatpush1.bf16.msra.mxu1 %v1683_v10 }
  0x18   : > { %737 = vmatprep.subr.bf16.mxu1 %v1691_v12  ;;  %930 = vmatprep.subr.bf16.mxu0 %v1694_v21 }
  0x1a   : > { %931 = vmatpush1.bf16.msra.mxu0 %v1692_v20 }
  0x1b   : > { %738 = vmatpush1.bf16.msra.mxu1 %v1689_v15 }
  0x1d   : > { %1607 = vmatmul.mubr.msk.bf16.gmra.mxu0 %vm369_vm0, %v1670_v8  ;;  %1623 = vmatmul.mubr.msk.bf16.gmra.mxu1 %vm369_vm0, %v1678_v17 }
  0x1e   : > { %1610 = vmatprep.mubr.msk.bf16.mxu0 %vm369_vm0, %v1671_v9  ;;  %1626 = vmatprep.mubr.msk.bf16.mxu1 %vm369_vm0, %v1679_v18 }
  0x25   : > { %1611 = vmatmul.mubr.msk.bf16.gmra.mxu0 %vm369_vm0, %v1672_v16  ;;  %1627 = vmatmul.mubr.msk.bf16.gmra.mxu1 %vm369_vm0, %v1680_v22 }
  0x26   : > { %1614 = vmatprep.mubr.msk.bf16.mxu0 %vm369_vm0, %v1673_v19  ;;  %1630 = vmatprep.mubr.msk.bf16.mxu1 %vm369_vm0, %v1681_v24 }
  0x2d   : > { %1615 = vmatmul.mubr.msk.bf16.gmra.mxu0 %vm369_vm0, %v1674_v23  ;;  %1631 = vmatmul.mubr.msk.bf16.gmra.mxu1 %vm369_vm0, %v1682_v25 }
  0x2e   : > { %755 = vmatprep.mubr.bf16.mxu1 %v1719_v26  ;;  %948 = vmatprep.mubr.bf16.mxu0 %v1719_v26 }
  0xd5   : > { %v1604_v27 = vpop.f32.mrf.mxu0  ;;  %v1620_v12 = vpop.f32.mrf.mxu1 }
  0xd6   : > { %v461_v41 = vadd.f32 %v1604_v27, %v1840_v29 }
  0xd7   : > { %v452_v28 = vpop.f32.mrf.mxu0  ;;  %v516_v15 = vpop.f32.mrf.mxu1 }
  0xd8   : > { %v453_v31 = vadd.f32 %v1840_v29, %v452_v28  ;;  %v581_v44 = vmax.f32 %v461_v41, 0.0  ;;  %v517_v24 = vadd.f32 %v1840_v29, %v516_v15 }
  0xd9   : > { %v1605_v30 = vpop.f32.mrf.mxu0  ;;  %v1621_v19 = vpop.f32.mrf.mxu1 }
  0xda   : > { %v579_v35 = vmax.f32 %v453_v31, 0.0  ;;  %v464_v38 = vadd.f32 %v1605_v30, %v1840_v29  ;;  %v595_v28 = vmax.f32 %v517_v24, 0.0 }
  0xdb   : > { %v455_v32 = vpop.f32.mrf.mxu0  ;;  %v519_v22 = vpop.f32.mrf.mxu1 }
  0xdc   : > { %v456_v33 = vadd.f32 %v1840_v29, %v455_v32  ;;  %v582_v42 = vmax.f32 %v464_v38, 0.0  ;;  %v520_v25 = vadd.f32 %v1840_v29, %v519_v22  ;;  %v525_v32 = vadd.f32 %v1620_v12, %v1840_v29 }
  0xdd   : > { %v1608_v34 = vpop.f32.mrf.mxu0  ;;  %v1624_v27 = vpop.f32.mrf.mxu1 }
  0xde   : > { %v580_v36 = vmax.f32 %v456_v33, 0.0  ;;  %v612_v45 = vpack.c.bf16 %v582_v42, %v581_v44  ;;  %v477_v52 = vadd.f32 %v1608_v34, %v1840_v29  ;;  %v596_v30 = vmax.f32 %v520_v25, 0.0 }
  0xdf   : > { %v468_v37 = vpop.f32.mrf.mxu0  ;;  %v532_v31 = vpop.f32.mrf.mxu1  ;;  %v528_v33 = vadd.f32 %v1621_v19, %v1840_v29 }
  0xe0   : > { %v611_v39 = vpack.c.bf16 %v580_v36, %v579_v35  ;;  %v469_v46 = vadd.f32 %v1840_v29, %v468_v37  ;;  %v585_v56 = vmax.f32 %v477_v52, 0.0  ;;  %v619_v34 = vpack.c.bf16 %v596_v30, %v595_v28 }
  0xe1   : > { %v1609_v40 = vpop.f32.mrf.mxu0  ;;  %v1625_v35 = vpop.f32.mrf.mxu1  ;;  %v597_v36 = vmax.f32 %v525_v32, 0.0  ;;  %v598_v37 = vmax.f32 %v528_v33, 0.0  ;;  %v1720_v32 = vmov 0.0  }
  0xe2   : > { %1545 = vmatmul.mubr.msk.bf16.vlgmr.msra.gmra.mxu1 %vm369_vm0, %v611_v39  ;;  %1561 = vmatmul.mubr.msk.bf16.vlgmr.msra.gmra.mxu0 %vm369_vm0, %v611_v39  ;;  %v583_v49 = vmax.f32 %v469_v46, 0.0  ;;  %v480_v53 = vadd.f32 %v1609_v40, %v1840_v29  ;;  %v533_v40 = vadd.f32 %v1840_v29, %v532_v31  ;;  %v541_v46 = vadd.f32 %v1624_v27, %v1840_v29 }
  0xe3   : > { %765 = vmatprep.mubr.bf16.mxu1 %v1719_v26  ;;  %958 = vmatprep.mubr.bf16.mxu0 %v1719_v26  ;;  %v471_v43 = vpop.f32.mrf.mxu0  ;;  %v535_v38 = vpop.f32.mrf.mxu1  ;;  %v620_v39 = vpack.c.bf16 %v598_v37, %v597_v36  ;;  %v2291_v27 = vlaneseq  ;;  %v2294_v31 = vmov 0 }
  0xe4   : > { %v472_v47 = vadd.f32 %v1840_v29, %v471_v43  ;;  %v586_v57 = vmax.f32 %v480_v53, 0.0  ;;  %v536_v41 = vadd.f32 %v1840_v29, %v535_v38  ;;  %v599_v43 = vmax.f32 %v533_v40, 0.0 }
  0xe5   : > { %v1612_v48 = vpop.f32.mrf.mxu0  ;;  %v1628_v42 = vpop.f32.mrf.mxu1  ;;  %vm1975_vm1 = vcmp.lt.s32.totalorder %v2291_v27, 512 }
  0xe6   : > { %v584_v50 = vmax.f32 %v472_v47, 0.0  ;;  %v614_v59 = vpack.c.bf16 %v586_v57, %v585_v56  ;;  %v493_v2 = vadd.f32 %v1612_v48, %v1840_v29  ;;  %v600_v44 = vmax.f32 %v536_v41, 0.0  ;;  %233 = vst.msk [vmem:[%s1968_s26] sm:$0xf] %vm1975_vm1, %v1720_v32 }
  0xe7   : > { %v484_v51 = vpop.f32.mrf.mxu0  ;;  %v544_v47 = vadd.f32 %v1625_v35, %v1840_v29  ;;  %v2295_v31 = vsel %vm1975_vm1, 4294967295, %v2294_v31 }
  0xe8   : > { %v613_v54 = vpack.c.bf16 %v584_v50, %v583_v49  ;;  %v485_v60 = vadd.f32 %v1840_v29, %v484_v51  ;;  %v589_v6 = vmax.f32 %v493_v2, 0.0  ;;  %v621_v48 = vpack.c.bf16 %v600_v44, %v599_v43  ;;  %2296 = vst [vmem:[#allocation2_spill] sm:$0xff] %v2295_v31 }
  0xe9   : > { %v1613_v55 = vpop.f32.mrf.mxu0  ;;  %v601_v50 = vmax.f32 %v541_v46, 0.0  ;;  %v602_v51 = vmax.f32 %v544_v47, 0.0 }
  0xea   : > { %1546 = vmatmul.mubr.msk.bf16.gmra.mxu1 %vm369_vm0, %v612_v45  ;;  %1562 = vmatmul.mubr.msk.bf16.gmra.mxu0 %vm369_vm0, %v612_v45  ;;  %v587_v63 = vmax.f32 %v485_v60, 0.0  ;;  %v496_v3 = vadd.f32 %v1613_v55, %v1840_v29  ;;  %v548_v45 = vpop.f32.mrf.mxu1  ;;  %v557_v60 = vadd.f32 %v1628_v42, %v1840_v29 }
  0xeb   : > { %775 = vmatprep.mubr.bf16.mxu1 %v1719_v26  ;;  %968 = vmatprep.mubr.bf16.mxu0 %v1719_v26  ;;  %v487_v58 = vpop.f32.mrf.mxu0  ;;  %v622_v53 = vpack.c.bf16 %v602_v51, %v601_v50 }
  0xec   : > { %v488_v61 = vadd.f32 %v1840_v29, %v487_v58  ;;  %v590_v7 = vmax.f32 %v496_v3, 0.0  ;;  %v1629_v49 = vpop.f32.mrf.mxu1 }
  0xed   : > { %v1616_v62 = vpop.f32.mrf.mxu0 }
  0xee   : > { %v588_v0 = vmax.f32 %v488_v61, 0.0  ;;  %v616_v9 = vpack.c.bf16 %v590_v7, %v589_v6  ;;  %v509_v16 = vadd.f32 %v1616_v62, %v1840_v29  ;;  %v551_v52 = vpop.f32.mrf.mxu1  ;;  %v560_v61 = vadd.f32 %v1629_v49, %v1840_v29 }
  0xef   : > { %v500_v1 = vpop.f32.mrf.mxu0  ;;  %v552_v55 = vadd.f32 %v1840_v29, %v551_v52 }
  0xf0   : > { %v615_v4 = vpack.c.bf16 %v588_v0, %v587_v63  ;;  %v501_v10 = vadd.f32 %v1840_v29, %v500_v1  ;;  %v593_v20 = vmax.f32 %v509_v16, 0.0  ;;  %v1632_v56 = vpop.f32.mrf.mxu1  ;;  %v605_v0 = vmax.f32 %v557_v60, 0.0 }
  0xf1   : > { %v1617_v5 = vpop.f32.mrf.mxu0  ;;  %v604_v58 = vmax.f32 %v552_v55, 0.0  ;;  %v606_v1 = vmax.f32 %v560_v61, 0.0 }
  0xf2   : > { %1547 = vmatmul.mubr.msk.bf16.gmra.mxu1 %vm369_vm0, %v613_v54  ;;  %1563 = vmatmul.mubr.msk.bf16.gmra.mxu0 %vm369_vm0, %v613_v54  ;;  %v591_v13 = vmax.f32 %v501_v10, 0.0  ;;  %v512_v17 = vadd.f32 %v1617_v5, %v1840_v29  ;;  %v549_v54 = vadd.f32 %v1840_v29, %v548_v45 }
  0xf3   : > { %785 = vmatprep.mubr.bf16.mxu1 %v1719_v26  ;;  %978 = vmatprep.mubr.bf16.mxu0 %v1719_v26  ;;  %v503_v8 = vpop.f32.mrf.mxu0  ;;  %v624_v3 = vpack.c.bf16 %v606_v1, %v605_v0 }
  0xf4   : > { %v504_v11 = vadd.f32 %v1840_v29, %v503_v8  ;;  %v594_v21 = vmax.f32 %v512_v17, 0.0  ;;  %v603_v57 = vmax.f32 %v549_v54, 0.0  ;;  %v573_v8 = vadd.f32 %v1632_v56, %v1840_v29 }
  0xf6   : > { %v592_v14 = vmax.f32 %v504_v11, 0.0  ;;  %v618_v23 = vpack.c.bf16 %v594_v21, %v593_v20  ;;  %v623_v62 = vpack.c.bf16 %v604_v58, %v603_v57  ;;  %v609_v11 = vmax.f32 %v573_v8, 0.0 }
  0xf8   : > { %v617_v18 = vpack.c.bf16 %v592_v14, %v591_v13 }
  0xfa   : > { %1548 = vmatmul.mubr.msk.bf16.gmra.mxu1 %vm369_vm0, %v614_v59  ;;  %1564 = vmatmul.mubr.msk.bf16.gmra.mxu0 %vm369_vm0, %v614_v59  ;;  %v564_v59 = vpop.f32.mrf.mxu1 }
  0xfb   : > { %795 = vmatprep.mubr.bf16.mxu1 %v1719_v26  ;;  %988 = vmatprep.mubr.bf16.mxu0 %v1719_v26 }
  0xfc   : > { %v1633_v63 = vpop.f32.mrf.mxu1 }
  0xfe   : > { %v567_v2 = vpop.f32.mrf.mxu1 }
  0xff   : > { %v568_v5 = vadd.f32 %v1840_v29, %v567_v2 }
 0x101   : > { %v608_v7 = vmax.f32 %v568_v5, 0.0 }
 0x102   : > { %1549 = vmatmul.mubr.msk.bf16.gmra.mxu1 %vm369_vm0, %v615_v4  ;;  %1565 = vmatmul.mubr.msk.bf16.gmra.mxu0 %vm369_vm0, %v615_v4  ;;  %v565_v4 = vadd.f32 %v1840_v29, %v564_v59 }
 0x103   : > { %805 = vmatprep.mubr.bf16.mxu1 %v1719_v26  ;;  %998 = vmatprep.mubr.bf16.mxu0 %v1719_v26 }
 0x104   : > { %v607_v6 = vmax.f32 %v565_v4, 0.0 }
 0x106   : > { %v625_v10 = vpack.c.bf16 %v608_v7, %v607_v6 }
 0x10a   : > { %1550 = vmatmul.mubr.msk.bf16.gmra.mxu1 %vm369_vm0, %v616_v9  ;;  %1566 = vmatmul.mubr.msk.bf16.gmra.mxu0 %vm369_vm0, %v616_v9  ;;  %v576_v9 = vadd.f32 %v1633_v63, %v1840_v29 }
 0x10b   : > { %815 = vmatprep.mubr.bf16.mxu1 %v1719_v26  ;;  %1008 = vmatprep.mubr.bf16.mxu0 %v1719_v26 }
 0x10c   : > { %v610_v12 = vmax.f32 %v576_v9, 0.0 }
 0x10e   : > { %v626_v13 = vpack.c.bf16 %v610_v12, %v609_v11 }
 0x112   : > { %1551 = vmatmul.mubr.msk.bf16.gmra.mxu1 %vm369_vm0, %v617_v18  ;;  %1567 = vmatmul.mubr.msk.bf16.gmra.mxu0 %vm369_vm0, %v617_v18 }
 0x113   : > { %825 = vmatprep.mubr.bf16.mxu1 %v1719_v26  ;;  %1018 = vmatprep.mubr.bf16.mxu0 %v1719_v26 }
 0x11a   : > { %1552 = vmatmul.mubr.msk.bf16.gmra.mxu1 %vm369_vm0, %v618_v23  ;;  %1568 = vmatmul.mubr.msk.bf16.gmra.mxu0 %vm369_vm0, %v618_v23 }
 0x11b   : > { %835 = vmatprep.mubr.bf16.mxu1 %v1719_v26  ;;  %1028 = vmatprep.mubr.bf16.mxu0 %v1719_v26 }
 0x122   : > { %1553 = vmatmul.mubr.msk.bf16.gmra.mxu1 %vm369_vm0, %v619_v34  ;;  %1569 = vmatmul.mubr.msk.bf16.gmra.mxu0 %vm369_vm0, %v619_v34 }
 0x123   : > { %845 = vmatprep.mubr.bf16.mxu1 %v1719_v26  ;;  %1038 = vmatprep.mubr.bf16.mxu0 %v1719_v26 }
 0x12a   : > { %1554 = vmatmul.mubr.msk.bf16.gmra.mxu1 %vm369_vm0, %v620_v39  ;;  %1570 = vmatmul.mubr.msk.bf16.gmra.mxu0 %vm369_vm0, %v620_v39 }
 0x12b   : > { %855 = vmatprep.mubr.bf16.mxu1 %v1719_v26  ;;  %1048 = vmatprep.mubr.bf16.mxu0 %v1719_v26 }
 0x132   : > { %1555 = vmatmul.mubr.msk.bf16.gmra.mxu1 %vm369_vm0, %v621_v48  ;;  %1571 = vmatmul.mubr.msk.bf16.gmra.mxu0 %vm369_vm0, %v621_v48 }
 0x133   : > { %865 = vmatprep.mubr.bf16.mxu1 %v1719_v26  ;;  %1058 = vmatprep.mubr.bf16.mxu0 %v1719_v26 }
 0x13a   : > { %1556 = vmatmul.mubr.msk.bf16.gmra.mxu1 %vm369_vm0, %v622_v53  ;;  %1572 = vmatmul.mubr.msk.bf16.gmra.mxu0 %vm369_vm0, %v622_v53 }
 0x13b   : > { %875 = vmatprep.mubr.bf16.mxu1 %v1719_v26  ;;  %1068 = vmatprep.mubr.bf16.mxu0 %v1719_v26 }
 0x142   : > { %1557 = vmatmul.mubr.msk.bf16.gmra.mxu1 %vm369_vm0, %v623_v62  ;;  %1573 = vmatmul.mubr.msk.bf16.gmra.mxu0 %vm369_vm0, %v623_v62 }
 0x143   : > { %885 = vmatprep.mubr.bf16.mxu1 %v1719_v26  ;;  %1078 = vmatprep.mubr.bf16.mxu0 %v1719_v26 }
 0x14a   : > { %1558 = vmatmul.mubr.msk.bf16.gmra.mxu1 %vm369_vm0, %v624_v3  ;;  %1574 = vmatmul.mubr.msk.bf16.gmra.mxu0 %vm369_vm0, %v624_v3 }
 0x14b   : > { %895 = vmatprep.mubr.bf16.mxu1 %v1719_v26  ;;  %1088 = vmatprep.mubr.bf16.mxu0 %v1719_v26 }
 0x152   : > { %1559 = vmatmul.mubr.msk.bf16.gmra.mxu1 %vm369_vm0, %v625_v10  ;;  %1575 = vmatmul.mubr.msk.bf16.gmra.mxu0 %vm369_vm0, %v625_v10 }
 0x153   : > { %905 = vmatprep.mubr.bf16.mxu1 %v1719_v26  ;;  %1098 = vmatprep.mubr.bf16.mxu0 %v1719_v26 }
 0x15a   : > { %1560 = vmatmul.mubr.msk.bf16.gmra.mxu1 %vm369_vm0, %v626_v13  ;;  %1576 = vmatmul.mubr.msk.bf16.gmra.mxu0 %vm369_vm0, %v626_v13 }
 0x1a2   : > { %v1936_v14 = vpop.f32.mrf.mxu1  ;;  %v1938_v29 = vpop.f32.mrf.mxu0 }
 0x1a4   : > { %v1940_v15 = vpop.f32.mrf.mxu1  ;;  %v1942_v16 = vpop.f32.mrf.mxu0 }
 0x1a6   : > { %v1944_v17 = vpop.f32.mrf.mxu1  ;;  %v1946_v18 = vpop.f32.mrf.mxu0 }
 0x1a8   : > { %v1948_v26 = vpop.f32.mrf.mxu1  ;;  %v1950_v19 = vpop.f32.mrf.mxu0 }
 0x1aa   : > { %v1952_v20 = vpop.f32.mrf.mxu1  ;;  %v1954_v21 = vpop.f32.mrf.mxu0 }
 0x1ac   : > { %v1956_v22 = vpop.f32.mrf.mxu1  ;;  %v1958_v23 = vpop.f32.mrf.mxu0 }
 0x1ae   : > { %v1961_v24 = vpop.f32.mrf.mxu1  ;;  %v1963_v25 = vpop.f32.mrf.mxu0 }
 0x1b0   : > { %v1970_v28 = vpop.f32.mrf.mxu1  ;;  %v1972_v30 = vpop.f32.mrf.mxu0 }
 0x1b2   : > { %v1982_v33 = vpop.f32.mrf.mxu1  ;;  %v1984_v34 = vpop.f32.mrf.mxu0 }
 0x1b4   : > { %v1986_v35 = vpop.f32.mrf.mxu1  ;;  %v1988_v36 = vpop.f32.mrf.mxu0 }
 0x1b6   : > { %v1990_v37 = vpop.f32.mrf.mxu1  ;;  %v1992_v38 = vpop.f32.mrf.mxu0 }
 0x1b8   : > { %v1994_v39 = vpop.f32.mrf.mxu1  ;;  %v1996_v40 = vpop.f32.mrf.mxu0 }
 0x1ba   : > { %v1998_v41 = vpop.f32.mrf.mxu1  ;;  %v2000_v42 = vpop.f32.mrf.mxu0 }
 0x1bc   : > { %v2002_v43 = vpop.f32.mrf.mxu1  ;;  %v2004_v44 = vpop.f32.mrf.mxu0 }
 0x1be   : > { %v2006_v45 = vpop.f32.mrf.mxu1  ;;  %v2008_v46 = vpop.f32.mrf.mxu0 }
 0x1c0   : > { %v2010_v47 = vpop.f32.mrf.mxu1  ;;  %v2012_v48 = vpop.f32.mrf.mxu0 }
 0x1c2   : > { %v2014_v49 = vpop.f32.mrf.mxu1  ;;  %v2016_v50 = vpop.f32.mrf.mxu0 }
 0x1c4   : > { %v2018_v51 = vpop.f32.mrf.mxu1  ;;  %v2020_v52 = vpop.f32.mrf.mxu0 }
 0x1c6   : > { %v2022_v53 = vpop.f32.mrf.mxu1  ;;  %v2024_v54 = vpop.f32.mrf.mxu0 }
 0x1c8   : > { %v2026_v55 = vpop.f32.mrf.mxu1  ;;  %v2028_v56 = vpop.f32.mrf.mxu0 }
 0x1ca   : > { %v2030_v57 = vpop.f32.mrf.mxu1  ;;  %v2032_v58 = vpop.f32.mrf.mxu0 }
 0x1cc   : > { %v2034_v59 = vpop.f32.mrf.mxu1  ;;  %v2036_v60 = vpop.f32.mrf.mxu0 }
 0x1ce   : > { %v2038_v61 = vpop.f32.mrf.mxu1  ;;  %v2040_v62 = vpop.f32.mrf.mxu0 }
 0x1d0   : > { %v2042_v63 = vpop.f32.mrf.mxu1  ;;  %v2044_v0 = vpop.f32.mrf.mxu0 }
 0x1d2   : > { %v2046_v1 = vpop.f32.mrf.mxu1  ;;  %v2048_v2 = vpop.f32.mrf.mxu0 }
 0x1d4   : > { %v2050_v3 = vpop.f32.mrf.mxu1  ;;  %v2052_v4 = vpop.f32.mrf.mxu0 }
 0x1d5   : > { %2297 = vst [vmem:[#allocation3_spill] sm:$0xff] %v2052_v4 }
 0x1d6   : > { %v2054_v5 = vpop.f32.mrf.mxu1  ;;  %v2056_v6 = vpop.f32.mrf.mxu0 }
 0x1d7   : > { %2298 = vst [vmem:[#allocation4_spill] sm:$0xff] %v2054_v5  ;;  %2299 = vst [vmem:[#allocation5_spill] sm:$0xff] %v2056_v6 }
 0x1d8   : > { %v2058_v7 = vpop.f32.mrf.mxu1  ;;  %v2060_v8 = vpop.f32.mrf.mxu0 }
 0x1d9   : > { %2300 = vst [vmem:[#allocation6_spill] sm:$0xff] %v2058_v7  ;;  %2301 = vst [vmem:[#allocation7_spill] sm:$0xff] %v2060_v8  ;;  %v1113_v7 = vmax.f32 %v1944_v17, 0.0  ;;  %v1115_v8 = vmax.f32 %v1946_v18, 0.0  ;;  %v1110_v17 = vmax.f32 %v1940_v15, 0.0  ;;  %v1112_v18 = vmax.f32 %v1942_v16, 0.0 }
 0x1da   : > { %v2062_v9 = vpop.f32.mrf.mxu1  ;;  %v2064_v10 = vpop.f32.mrf.mxu0  ;;  %v1122_v15 = vmax.f32 %v1970_v28, 0.0  ;;  %v1124_v16 = vmax.f32 %v1972_v30, 0.0 }
 0x1db   : > { %2302 = vst [vmem:[#allocation8_spill] sm:$0xff] %v2062_v9  ;;  %2303 = vst [vmem:[#allocation9_spill] sm:$0xff] %v2064_v10  ;;  %v1114_v9 = vmax.f32 %v1948_v26, 0.0  ;;  %v1116_v10 = vmax.f32 %v1950_v19, 0.0  ;;  %v1118_v26 = vmax.f32 %v1956_v22, 0.0  ;;  %v1120_v19 = vmax.f32 %v1958_v23, 0.0 }
 0x1dc   : > { %v2066_v11 = vpop.f32.mrf.mxu1  ;;  %v2068_v12 = vpop.f32.mrf.mxu0 }
 0x1dd   : > { %2304 = vst [vmem:[#allocation10_spill] sm:$0xff] %v2066_v11  ;;  %2305 = vst [vmem:[#allocation11_spill] sm:$0xff] %v2068_v12  ;;  %v1275_v5 = vadd.f32 %v1114_v9, %v1110_v17  ;;  %v1128_v9 = vmax.f32 %v1988_v36, 0.0 }
 0x1de   : > { %v2070_v13 = vpop.f32.mrf.mxu1  ;;  %v2072_v32 = vpop.f32.mrf.mxu0 }
 0x1df   : > { %2306 = vst [vmem:[#allocation12_spill] sm:$0xff] %v2070_v13  ;;  %2307 = vst [vmem:[#allocation13_spill] sm:$0xff] %v2072_v32  ;;  %v1109_v13 = vmax.f32 %v1936_v14, 0.0  ;;  %v1111_v32 = vmax.f32 %v1938_v29, 0.0  ;;  %v1121_v29 = vmax.f32 %v1961_v24, 0.0 }
 0x1e0   : > { %v2074_v27 = vpop.f32.mrf.mxu1  ;;  %v2076_v31 = vpop.f32.mrf.mxu0 }
 0x1e1   : > { %2308 = vst [vmem:[#allocation14_spill] sm:$0xff] %v2074_v27  ;;  %2309 = vst [vmem:[#allocation15_spill] sm:$0xff] %v2076_v31  ;;  %v1117_v27 = vmax.f32 %v1952_v20, 0.0  ;;  %v1119_v31 = vmax.f32 %v1954_v21, 0.0  ;;  %v1312_v14 = vadd.f32 %v1115_v8, %v1111_v32  ;;  %v1123_v20 = vmax.f32 %v1963_v25, 0.0 }
 0x1e2   : > { %v2082_v6 = vpop.f32.mrf.mxu1  ;;  %v2084_v11 = vpop.f32.mrf.mxu0  ;;  %v1349_v21 = vadd.f32 %v1116_v10, %v1112_v18  ;;  %v1276_v8 = vadd.f32 %v1275_v5, %v1118_v26  ;;  %v1126_v25 = vmax.f32 %v1986_v35, 0.0  ;;  %v1129_v32 = vmax.f32 %v1990_v37, 0.0 }
 0x1e3   : > { %2310 = vst [vmem:[#allocation16_spill] sm:$0xff] %v2082_v6  ;;  %2311 = vst [vmem:[#allocation17_spill] sm:$0xff] %v2084_v11  ;;  %v1238_v11 = vadd.f32 %v1113_v7, %v1109_v13  ;;  %v1127_v7 = vmax.f32 %v1984_v34, 0.0  ;;  %v1130_v34 = vmax.f32 %v1994_v39, 0.0  ;;  %v1132_v5 = vmax.f32 %v1996_v40, 0.0 }
 0x1e4   : > { %v2094_v12 = vpop.f32.mrf.mxu1  ;;  %v2096_v6 = vpop.f32.mrf.mxu0  ;;  %v1350_v24 = vadd.f32 %v1349_v21, %v1120_v19  ;;  %v1133_v18 = vmax.f32 %v1998_v41, 0.0  ;;  %v1136_v19 = vmax.f32 %v2004_v44, 0.0 }
 0x1e5   : > { %2312 = vst [vmem:[#allocation18_spill] sm:$0xff] %v2094_v12  ;;  %2313 = vst [vmem:[#allocation19_spill] sm:$0xff] %v2096_v6  ;;  %v1239_v23 = vadd.f32 %v1238_v11, %v1117_v27  ;;  %v1313_v12 = vadd.f32 %v1312_v14, %v1119_v31  ;;  %v1125_v6 = vmax.f32 %v1982_v33, 0.0  ;;  %v1131_v27 = vmax.f32 %v1992_v38, 0.0 }
 0x1e6   : > { %v2102_v4 = vpop.f32.mrf.mxu1  ;;  %v2104_v22 = vpop.f32.mrf.mxu0  ;;  %v1277_v31 = vadd.f32 %v1276_v8, %v1122_v15  ;;  %v1351_v33 = vadd.f32 %v1350_v24, %v1124_v16  ;;  %v1134_v38 = vmax.f32 %v2002_v43, 0.0  ;;  %v1140_v15 = vmax.f32 %v2012_v48, 0.0 }
 0x1e7   : > { %v1240_v30 = vadd.f32 %v1239_v23, %v1121_v29  ;;  %v1314_v13 = vadd.f32 %v1313_v12, %v1123_v20  ;;  %v1135_v12 = vmax.f32 %v2000_v42, 0.0  ;;  %v1137_v20 = vmax.f32 %v2006_v45, 0.0 }
 0x1e8   : > { %v2110_v10 = vpop.f32.mrf.mxu1  ;;  %v2112_v28 = vpop.f32.mrf.mxu0  ;;  %v1278_v26 = vadd.f32 %v1277_v31, %v1126_v25  ;;  %v1352_v37 = vadd.f32 %v1351_v33, %v1128_v9  ;;  %v1138_v42 = vmax.f32 %v2010_v47, 0.0  ;;  %v1143_v8 = vmax.f32 %v2016_v50, 0.0 }
 0x1e9   : > { %v1241_v36 = vadd.f32 %v1240_v30, %v1125_v6  ;;  %v1315_v17 = vadd.f32 %v1314_v13, %v1127_v7  ;;  %v1139_v6 = vmax.f32 %v2008_v46, 0.0  ;;  %v1141_v7 = vmax.f32 %v2014_v49, 0.0 }
 0x1ea   : > { %v2118_v11 = vpop.f32.mrf.mxu1  ;;  %v2120_v35 = vpop.f32.mrf.mxu0  ;;  %v1279_v21 = vadd.f32 %v1278_v26, %v1130_v34  ;;  %v1353_v41 = vadd.f32 %v1352_v37, %v1132_v5  ;;  %v1142_v46 = vmax.f32 %v2018_v51, 0.0  ;;  %v1144_v25 = vmax.f32 %v2020_v52, 0.0 }
 0x1eb   : > { %v1242_v40 = vadd.f32 %v1241_v36, %v1129_v32  ;;  %v1316_v29 = vadd.f32 %v1315_v17, %v1131_v27  ;;  %v1145_v13 = vmax.f32 %v2022_v53, 0.0  ;;  %v1147_v32 = vmax.f32 %v2024_v54, 0.0 }
 0x1ec   : > { %v2126_v14 = vpop.f32.mrf.mxu1  ;;  %v2128_v39 = vpop.f32.mrf.mxu0  ;;  %v1280_v24 = vadd.f32 %v1279_v21, %v1134_v38  ;;  %v1354_v45 = vadd.f32 %v1353_v41, %v1136_v19  ;;  %v1146_v50 = vmax.f32 %v2026_v55, 0.0  ;;  %v1148_v31 = vmax.f32 %v2028_v56, 0.0 }
 0x1ed   : > { %v1243_v44 = vadd.f32 %v1242_v40, %v1133_v18  ;;  %v1317_v23 = vadd.f32 %v1316_v29, %v1135_v12  ;;  %v1149_v5 = vmax.f32 %v2030_v57, 0.0  ;;  %v1151_v36 = vmax.f32 %v2032_v58, 0.0 }
 0x1ee   : > { %v2134_v16 = vpop.f32.mrf.mxu1  ;;  %v2136_v43 = vpop.f32.mrf.mxu0  ;;  %v1281_v27 = vadd.f32 %v1280_v24, %v1138_v42  ;;  %v1355_v49 = vadd.f32 %v1354_v45, %v1140_v15  ;;  %v1150_v54 = vmax.f32 %v2034_v59, 0.0  ;;  %v1152_v18 = vmax.f32 %v2036_v60, 0.0  ;;  %v2314_v42 = vld [vmem:[#allocation3_spill] sm:$0xff]  ;;  %v2316_v24 = vld [vmem:[#allocation5_spill] sm:$0xff] }
 0x1ef   : > { %v1244_v48 = vadd.f32 %v1243_v44, %v1137_v20  ;;  %v1318_v30 = vadd.f32 %v1317_v23, %v1139_v6  ;;  %v1153_v37 = vmax.f32 %v2038_v61, 0.0  ;;  %v1155_v38 = vmax.f32 %v2040_v62, 0.0 }
 0x1f0   : > { %v2142_v9 = vpop.f32.mrf.mxu1  ;;  %v2144_v47 = vpop.f32.mrf.mxu0  ;;  %v1282_v17 = vadd.f32 %v1281_v27, %v1142_v46  ;;  %v1356_v53 = vadd.f32 %v1355_v49, %v1144_v25  ;;  %v1154_v58 = vmax.f32 %v2042_v63, 0.0  ;;  %v1156_v40 = vmax.f32 %v2044_v0, 0.0  ;;  %v2317_v25 = vld [vmem:[#allocation6_spill] sm:$0xff]  ;;  %v2319_v49 = vld [vmem:[#allocation8_spill] sm:$0xff] }
 0x1f1   : > { %v1245_v52 = vadd.f32 %v1244_v48, %v1141_v7  ;;  %v1319_v34 = vadd.f32 %v1318_v30, %v1143_v8  ;;  %v1157_v6 = vmax.f32 %v2046_v1, 0.0  ;;  %v1159_v21 = vmax.f32 %v2048_v2, 0.0  ;;  %v2315_v7 = vld [vmem:[#allocation4_spill] sm:$0xff]  ;;  %v2318_v48 = vld [vmem:[#allocation7_spill] sm:$0xff] }
 0x1f2   : > { %v2150_v33 = vpop.f32.mrf.mxu1  ;;  %v2152_v51 = vpop.f32.mrf.mxu0  ;;  %v1283_v19 = vadd.f32 %v1282_v17, %v1146_v50  ;;  %v1357_v57 = vadd.f32 %v1356_v53, %v1148_v31  ;;  %v1158_v62 = vmax.f32 %v2050_v3, 0.0  ;;  %v1160_v15 = vmax.f32 %v2314_v42, 0.0  ;;  %v2320_v31 = vld [vmem:[#allocation9_spill] sm:$0xff]  ;;  %v2322_v53 = vld [vmem:[#allocation11_spill] sm:$0xff] }
 0x1f3   : > { %v1246_v56 = vadd.f32 %v1245_v52, %v1145_v13  ;;  %v1320_v26 = vadd.f32 %v1319_v34, %v1147_v32  ;;  %v1161_v8 = vmax.f32 %v2315_v7, 0.0  ;;  %v1163_v45 = vmax.f32 %v2316_v24, 0.0  ;;  %v2328_v7 = vld [vmem:[#allocation17_spill] sm:$0xff] }
 0x1f4   : > { %v2158_v12 = vpop.f32.mrf.mxu1  ;;  %v2160_v55 = vpop.f32.mrf.mxu0  ;;  %v1284_v41 = vadd.f32 %v1283_v19, %v1150_v54  ;;  %v1358_v61 = vadd.f32 %v1357_v57, %v1152_v18  ;;  %v1162_v2 = vmax.f32 %v2317_v25, 0.0  ;;  %v1164_v30 = vmax.f32 %v2318_v48, 0.0  ;;  %v2324_v57 = vld [vmem:[#allocation13_spill] sm:$0xff]  ;;  %v2330_v25 = vld [vmem:[#allocation19_spill] sm:$0xff] }
 0x1f5   : > { %v1247_v60 = vadd.f32 %v1246_v56, %v1149_v5  ;;  %v1321_v20 = vadd.f32 %v1320_v26, %v1151_v36  ;;  %v1165_v50 = vmax.f32 %v2319_v49, 0.0  ;;  %v1167_v52 = vmax.f32 %v2320_v31, 0.0  ;;  %v2321_v36 = vld [vmem:[#allocation10_spill] sm:$0xff] }
 0x1f6   : > { %v2166_v29 = vpop.f32.mrf.mxu1  ;;  %v2168_v59 = vpop.f32.mrf.mxu0  ;;  %v1285_v46 = vadd.f32 %v1284_v41, %v1154_v58  ;;  %v1359_v1 = vadd.f32 %v1358_v61, %v1156_v40  ;;  %v1166_v17 = vmax.f32 %v2321_v36, 0.0  ;;  %v1168_v54 = vmax.f32 %v2322_v53, 0.0 }
 0x1f7   : > { %v1248_v0 = vadd.f32 %v1247_v60, %v1153_v37  ;;  %v1322_v23 = vadd.f32 %v1321_v20, %v1155_v38  ;;  %v2323_v38 = vld [vmem:[#allocation12_spill] sm:$0xff]  ;;  %v1171_v58 = vmax.f32 %v2324_v57, 0.0  ;;  %v2325_v20 = vld [vmem:[#allocation14_spill] sm:$0xff]  ;;  %v1177_v49 = vmax.f32 %v2102_v4, 0.0 }
 0x1f8   : > { %v2174_v44 = vpop.f32.mrf.mxu1  ;;  %v2176_v63 = vpop.f32.mrf.mxu0  ;;  %v1286_v34 = vadd.f32 %v1285_v46, %v1158_v62  ;;  %v1360_v5 = vadd.f32 %v1359_v1, %v1160_v15  ;;  %v1169_v19 = vmax.f32 %v2323_v38, 0.0  ;;  %v2329_v46 = vld [vmem:[#allocation18_spill] sm:$0xff] }
 0x1f9   : > { %v1249_v32 = vadd.f32 %v1248_v0, %v1157_v6  ;;  %v1323_v27 = vadd.f32 %v1322_v23, %v1159_v21  ;;  %v1170_v6 = vmax.f32 %v2325_v20, 0.0  ;;  %v2326_v21 = vld [vmem:[#allocation15_spill] sm:$0xff]  ;;  %v2327_v0 = vld [vmem:[#allocation16_spill] sm:$0xff]  ;;  %v1174_v1 = vmax.f32 %v2329_v46, 0.0 }
 0x1fa   : > { %v2182_v13 = vpop.f32.mrf.mxu1  ;;  %v2184_v3 = vpop.f32.mrf.mxu0  ;;  %v1287_v40 = vadd.f32 %v1286_v34, %v1162_v2  ;;  %v1361_v60 = vadd.f32 %v1360_v5, %v1164_v30  ;;  %v1172_v41 = vmax.f32 %v2326_v21, 0.0  ;;  %v1173_v23 = vmax.f32 %v2327_v0, 0.0 }
 0x1fb   : > { %v1250_v26 = vadd.f32 %v1249_v32, %v1161_v8  ;;  %v1324_v37 = vadd.f32 %v1323_v27, %v1163_v45  ;;  %v1175_v8 = vmax.f32 %v2328_v7, 0.0  ;;  %v1176_v2 = vmax.f32 %v2330_v25, 0.0 }
 0x1fc   : > { %v2190_v18 = vpop.f32.mrf.mxu1  ;;  %v2192_v56 = vpop.f32.mrf.mxu0  ;;  %v1288_v24 = vadd.f32 %v1287_v40, %v1166_v17  ;;  %v1362_v45 = vadd.f32 %v1361_v60, %v1168_v54  ;;  %v1178_v34 = vmax.f32 %v2110_v10, 0.0  ;;  %v1180_v5 = vmax.f32 %v2112_v28, 0.0 }
 0x1fd   : > { %v1251_v42 = vadd.f32 %v1250_v26, %v1165_v50  ;;  %v1325_v15 = vadd.f32 %v1324_v37, %v1167_v52  ;;  %v1179_v50 = vmax.f32 %v2104_v22, 0.0  ;;  %v1181_v26 = vmax.f32 %v2118_v11, 0.0 }
 0x1fe   : > { %v2198_v61 = vpop.f32.mrf.mxu1  ;;  %v2200_v62 = vpop.f32.mrf.mxu0  ;;  %v1289_v31 = vadd.f32 %v1288_v24, %v1170_v6  ;;  %v1363_v52 = vadd.f32 %v1362_v45, %v1172_v41  ;;  %v1183_v37 = vmax.f32 %v2120_v35, 0.0  ;;  %v1182_v22 = vmax.f32 %v2126_v14, 0.0 }
 0x1ff   : > { %v1252_v32 = vadd.f32 %v1251_v42, %v1169_v19  ;;  %v1326_v27 = vadd.f32 %v1325_v15, %v1171_v58  ;;  %v1184_v19 = vmax.f32 %v2128_v39, 0.0  ;;  %v1185_v40 = vmax.f32 %v2134_v16, 0.0 }
 0x200   : > { %v2206_v48 = vpop.f32.mrf.mxu1  ;;  %v2208_v30 = vpop.f32.mrf.mxu0  ;;  %v1290_v38 = vadd.f32 %v1289_v31, %v1174_v1  ;;  %v1364_v4 = vadd.f32 %v1363_v52, %v1176_v2  ;;  %v1187_v60 = vmax.f32 %v2136_v43, 0.0  ;;  %v1186_v35 = vmax.f32 %v2142_v9, 0.0 }
 0x201   : > { %v1253_v53 = vadd.f32 %v1252_v32, %v1173_v23  ;;  %v1327_v54 = vadd.f32 %v1326_v27, %v1175_v8  ;;  %v1188_v6 = vmax.f32 %v2144_v47, 0.0  ;;  %v1189_v42 = vmax.f32 %v2150_v33, 0.0 }
 0x202   : > { %v2214_v36 = vpop.f32.mrf.mxu1  ;;  %v2216_v17 = vpop.f32.mrf.mxu0  ;;  %v1291_v20 = vadd.f32 %v1290_v38, %v1178_v34  ;;  %v1365_v11 = vadd.f32 %v1364_v4, %v1180_v5  ;;  %v1191_v15 = vmax.f32 %v2152_v51, 0.0  ;;  %v1190_v43 = vmax.f32 %v2158_v12, 0.0 }
 0x203   : > { %v1254_v28 = vadd.f32 %v1253_v53, %v1177_v49  ;;  %v1328_v58 = vadd.f32 %v1327_v54, %v1179_v50  ;;  %v1192_v23 = vmax.f32 %v2160_v55, 0.0  ;;  %v1193_v24 = vmax.f32 %v2166_v29, 0.0 }
 0x204   : > { %v2222_v57 = vpop.f32.mrf.mxu1  ;;  %v2224_v10 = vpop.f32.mrf.mxu0  ;;  %v1292_v0 = vadd.f32 %v1291_v20, %v1182_v22  ;;  %v1366_v16 = vadd.f32 %v1365_v11, %v1184_v19  ;;  %v1195_v45 = vmax.f32 %v2168_v59, 0.0  ;;  %v1194_v51 = vmax.f32 %v2174_v44, 0.0 }
 0x205   : > { %v1255_v39 = vadd.f32 %v1254_v28, %v1181_v26  ;;  %v1329_v41 = vadd.f32 %v1328_v58, %v1183_v37  ;;  %v1196_v1 = vmax.f32 %v2176_v63, 0.0  ;;  %v1197_v32 = vmax.f32 %v2182_v13, 0.0 }
 0x206   : > { %v2230_v21 = vpop.f32.mrf.mxu1  ;;  %v2232_v14 = vpop.f32.mrf.mxu0  ;;  %v1293_v46 = vadd.f32 %v1292_v0, %v1186_v35  ;;  %v1367_v33 = vadd.f32 %v1366_v16, %v1188_v6  ;;  %v1199_v27 = vmax.f32 %v2184_v3, 0.0  ;;  %v1198_v59 = vmax.f32 %v2190_v18, 0.0 }
 0x207   : > { %v1256_v47 = vadd.f32 %v1255_v39, %v1185_v40  ;;  %v1330_v8 = vadd.f32 %v1329_v41, %v1187_v60  ;;  %v1200_v50 = vmax.f32 %v2192_v56, 0.0  ;;  %v1201_v34 = vmax.f32 %v2198_v61, 0.0 }
 0x208   : > { %v2238_v7 = vpop.f32.mrf.mxu1  ;;  %v2240_v9 = vpop.f32.mrf.mxu0  ;;  %v1294_v49 = vadd.f32 %v1293_v46, %v1190_v43  ;;  %v1368_v29 = vadd.f32 %v1367_v33, %v1192_v23  ;;  %v1203_v5 = vmax.f32 %v2200_v62, 0.0  ;;  %v1202_v13 = vmax.f32 %v2206_v48, 0.0 }
 0x209   : > { %v1257_v55 = vadd.f32 %v1256_v47, %v1189_v42  ;;  %v1331_v2 = vadd.f32 %v1330_v8, %v1191_v15  ;;  %v1204_v3 = vmax.f32 %v2208_v30, 0.0  ;;  %v1205_v56 = vmax.f32 %v2214_v36, 0.0 }
 0x20a   : > { %v2246_v25 = vpop.f32.mrf.mxu1  ;;  %v2248_v12 = vpop.f32.mrf.mxu0  ;;  %v1295_v53 = vadd.f32 %v1294_v49, %v1194_v51  ;;  %v1369_v54 = vadd.f32 %v1368_v29, %v1196_v1  ;;  %v1207_v4 = vmax.f32 %v2216_v17, 0.0  ;;  %v1206_v61 = vmax.f32 %v2222_v57, 0.0 }
 0x20b   : > { %v1258_v52 = vadd.f32 %v1257_v55, %v1193_v24  ;;  %v1332_v63 = vadd.f32 %v1331_v2, %v1195_v45  ;;  %v1208_v62 = vmax.f32 %v2224_v10, 0.0  ;;  %v1209_v30 = vmax.f32 %v2230_v21, 0.0 }
 0x20c   : > { %v889_v31 = vpop.f32.mrf.mxu1  ;;  %v1082_v44 = vpop.f32.mrf.mxu0  ;;  %v1296_v22 = vadd.f32 %v1295_v53, %v1198_v59  ;;  %v1370_v19 = vadd.f32 %v1369_v54, %v1200_v50  ;;  %v1211_v60 = vmax.f32 %v2232_v14, 0.0  ;;  %v1210_v36 = vmax.f32 %v2238_v7, 0.0 }
 0x20d   : > { %v1259_v38 = vadd.f32 %v1258_v52, %v1197_v32  ;;  %v1333_v18 = vadd.f32 %v1332_v63, %v1199_v27  ;;  %v1212_v17 = vmax.f32 %v2240_v9, 0.0  ;;  %v1213_v10 = vmax.f32 %v2246_v25, 0.0 }
 0x20e   : > { %v891_v26 = vpop.f32.mrf.mxu1  ;;  %v1084_v37 = vpop.f32.mrf.mxu0  ;;  %v1297_v20 = vadd.f32 %v1296_v22, %v1202_v13  ;;  %v1371_v11 = vadd.f32 %v1370_v19, %v1204_v3  ;;  %v1215_v41 = vmax.f32 %v2248_v12, 0.0  ;;  %v1214_v0 = vmax.f32 %v889_v31, 0.0 }
 0x20f   : > { %v1260_v40 = vadd.f32 %v1259_v38, %v1201_v34  ;;  %v1334_v48 = vadd.f32 %v1333_v18, %v1203_v5  ;;  %v1216_v21 = vmax.f32 %v1082_v44, 0.0  ;;  %v1217_v47 = vmax.f32 %v891_v26, 0.0 }
 0x210   : > { %v893_v28 = vpop.f32.mrf.mxu1  ;;  %v1086_v58 = vpop.f32.mrf.mxu0  ;;  %v1298_v42 = vadd.f32 %v1297_v20, %v1206_v61  ;;  %v1372_v15 = vadd.f32 %v1371_v11, %v1208_v62  ;;  %v1219_v7 = vmax.f32 %v1084_v37, 0.0 }
 0x211   : > { %v1261_v39 = vadd.f32 %v1260_v40, %v1205_v56  ;;  %v1335_v57 = vadd.f32 %v1334_v48, %v1207_v4  ;;  %v1218_v24 = vmax.f32 %v893_v28, 0.0  ;;  %v1220_v45 = vmax.f32 %v1086_v58, 0.0 }
 0x212   : > { %v897_v35 = vpop.f32.mrf.mxu1  ;;  %v1090_v6 = vpop.f32.mrf.mxu0  ;;  %v1299_v8 = vadd.f32 %v1298_v42, %v1210_v36  ;;  %v1373_v9 = vadd.f32 %v1372_v15, %v1212_v17 }
 0x213   : > { %v1262_v43 = vadd.f32 %v1261_v39, %v1209_v30  ;;  %v1336_v23 = vadd.f32 %v1335_v57, %v1211_v60  ;;  %v1221_v25 = vmax.f32 %v897_v35, 0.0  ;;  %v1223_v12 = vmax.f32 %v1090_v6, 0.0 }
 0x214   : > { %v899_v16 = vpop.f32.mrf.mxu1  ;;  %v1092_v14 = vpop.f32.mrf.mxu0  ;;  %v1300_v55 = vadd.f32 %v1299_v8, %v1214_v0  ;;  %v1374_v2 = vadd.f32 %v1373_v9, %v1216_v21 }
 0x215   : > { %v1263_v51 = vadd.f32 %v1262_v43, %v1213_v10  ;;  %v1337_v1 = vadd.f32 %v1336_v23, %v1215_v41  ;;  %v1222_v32 = vmax.f32 %v899_v16, 0.0  ;;  %v1224_v27 = vmax.f32 %v1092_v14, 0.0 }
 0x216   : > { %v901_v46 = vpop.f32.mrf.mxu1  ;;  %v1094_v33 = vpop.f32.mrf.mxu0  ;;  %v1301_v52 = vadd.f32 %v1300_v55, %v1218_v24  ;;  %v1375_v63 = vadd.f32 %v1374_v2, %v1220_v45 }
 0x217   : > { %v1264_v59 = vadd.f32 %v1263_v51, %v1217_v47  ;;  %v1338_v50 = vadd.f32 %v1337_v1, %v1219_v7  ;;  %v1225_v31 = vmax.f32 %v901_v46, 0.0  ;;  %v1227_v44 = vmax.f32 %v1094_v33, 0.0 }
 0x218   : > { %v903_v49 = vpop.f32.mrf.mxu1  ;;  %v1096_v29 = vpop.f32.mrf.mxu0  ;;  %v1302_v38 = vadd.f32 %v1301_v52, %v1222_v32  ;;  %v1376_v18 = vadd.f32 %v1375_v63, %v1224_v27  ;;  %v1721_v47 = vmov 1966171168  }
 0x219   : > { %v1226_v34 = vmax.f32 %v903_v49, 0.0  ;;  %v1228_v5 = vmax.f32 %v1096_v29, 0.0  ;;  %v1265_v13 = vadd.f32 %v1264_v59, %v1221_v25  ;;  %v1339_v3 = vadd.f32 %v1338_v50, %v1223_v12 }
 0x21a   : > { %v907_v53 = vpop.f32.mrf.mxu1  ;;  %v1100_v54 = vpop.f32.mrf.mxu0  ;;  %v1393_v7 = vunpack.c.l.s4 %v1721_v47  ;;  %v2331_v12 = vlaneseq }
 0x21b   : > { %v1229_v26 = vmax.f32 %v907_v53, 0.0  ;;  %v1231_v37 = vmax.f32 %v1100_v54, 0.0  ;;  %v1266_v22 = vadd.f32 %v1265_v13, %v1225_v31  ;;  %v1340_v19 = vadd.f32 %v1339_v3, %v1227_v44  ;;  %v1237_v3 = vld [vmem:[%s1968_s26] sm:$0xf] }
 0x21c   : > { %v909_v56 = vpop.f32.mrf.mxu1  ;;  %v1102_v4 = vpop.f32.mrf.mxu0  ;;  %v1303_v28 = vadd.f32 %v1302_v38, %v1226_v34  ;;  %v1377_v58 = vadd.f32 %v1376_v18, %v1228_v5  ;;  %v1394_v25 = vunpack.c.0.s8 %v1393_v7  ;;  %v1396_v55 = vshrl.u32 %v2331_v12, 7 }
 0x21d   : > { %v1230_v61 = vmax.f32 %v909_v56, 0.0  ;;  %v1232_v62 = vmax.f32 %v1102_v4, 0.0  ;;  %v1267_v30 = vadd.f32 %v1266_v22, %v1229_v26  ;;  %v1341_v60 = vadd.f32 %v1340_v19, %v1231_v37 }
 0x21e   : > { %v911_v40 = vpop.f32.mrf.mxu1  ;;  %v1104_v48 = vpop.f32.mrf.mxu0  ;;  %v1397_v50 = vsub.s32 %v1394_v25, %v1396_v55 }
 0x21f   : > { %v1233_v20 = vmax.f32 %v911_v40, 0.0  ;;  %v1235_v11 = vmax.f32 %v1104_v48, 0.0  ;;  %v1304_v36 = vadd.f32 %v1303_v28, %v1230_v61  ;;  %v1378_v17 = vadd.f32 %v1377_v58, %v1232_v62 }
 0x220   : > { %v913_v35 = vpop.f32.mrf.mxu1  ;;  %v1106_v6 = vpop.f32.mrf.mxu0 }
 0x221   : > { %v1268_v39 = vadd.f32 %v1267_v30, %v1233_v20  ;;  %v1342_v57 = vadd.f32 %v1341_v60, %v1235_v11  ;;  %v1234_v10 = vmax.f32 %v913_v35, 0.0  ;;  %v1236_v41 = vmax.f32 %v1106_v6, 0.0 }
 0x223   : > { %v1269_v42 = vrot.slane %v1268_v39, 4  ;;  %v1343_v15 = vrot.slane %v1342_v57, 4  ;;  %v1305_v0 = vadd.f32 %v1304_v36, %v1234_v10  ;;  %v1379_v21 = vadd.f32 %v1378_v17, %v1236_v41 }
 0x225   : > { %v1270_v16 = vadd.f32 %v1269_v42, %v1268_v39  ;;  %v1344_v14 = vadd.f32 %v1343_v15, %v1342_v57  ;;  %v1306_v43 = vrot.slane %v1305_v0, 4  ;;  %v1380_v23 = vrot.slane %v1379_v21, 4 }
 0x227   : > { %v1271_v8 = vrot.slane %v1270_v16, 2  ;;  %v1345_v9 = vrot.slane %v1344_v14, 2  ;;  %v1307_v24 = vadd.f32 %v1306_v43, %v1305_v0  ;;  %v1381_v45 = vadd.f32 %v1380_v23, %v1379_v21 }
 0x229   : > { %v1272_v46 = vadd.f32 %v1271_v8, %v1270_v16  ;;  %v1346_v33 = vadd.f32 %v1345_v9, %v1344_v14  ;;  %v1308_v51 = vrot.slane %v1307_v24, 2  ;;  %v1382_v1 = vrot.slane %v1381_v45, 2 }
 0x22b   : > { %v1273_v2 = vrot.slane %v1272_v46, 1  ;;  %v1347_v32 = vrot.slane %v1346_v33, 1  ;;  %v1309_v27 = vadd.f32 %v1308_v51, %v1307_v24  ;;  %v1383_v49 = vadd.f32 %v1382_v1, %v1381_v45 }
 0x22d   : > { %v1310_v29 = vrot.slane %v1309_v27, 1  ;;  %v1384_v59 = vrot.slane %v1383_v49, 1  ;;  %v1274_v31 = vadd.f32 %v1273_v2, %v1272_v46  ;;  %v1348_v44 = vadd.f32 %v1347_v32, %v1346_v33 }
 0x22f   : > { %v1311_v52 = vadd.f32 %v1310_v29, %v1309_v27  ;;  %v1385_v63 = vadd.f32 %v1384_v59, %v1383_v49 }
 0x231   : > { %v1390_v34 = vcombine.low %v1274_v31, %v1311_v52  ;;  %v1391_v5 = vcombine.low %v1348_v44, %v1385_v63 }
 0x233   : > { %v1398_v53 = vrot.slane %v1390_v34, %v1397_v50  ;;  %v1405_v54 = vrot.slane %v1391_v5, %v1397_v50 }
 0x235   : > { %v1406_v13 = vcombine.low %v1398_v53, %v1405_v54 }
 0x237   : > { %v1413_v26 = vrot.slane %v1406_v13, %v1397_v50 }
 0x239   : > { %v1415_v37 = vadd.f32 %v1413_v26, %v1237_v3 }
 0x23b   : > { %1420 = vst.msk [vmem:[%s1968_s26] sm:$0xf] %vm1975_vm1, %v1415_v37 }
 0x242   : > { %v1424_v18 = vld [vmem:[%s1968_s26] sm:$0xf] }
 0x243   : > { %v1425_v56 = vmul.f32 0.00390625, %v1424_v18 }
 0x245   : > { %1426 = vst.msk [vmem:[%s1968_s26] sm:$0xf] %vm1975_vm1, %v1425_v56 }
 0x246 PF: > { %s14_s17 = sadd.s32 1, %s1717_s17   ;;  %s2333_s15 = smov %s1713_s16 }
 0x247   : > { %p11_p5 = scmp.ge.s32.totalorder %s14_s17, 4   ;;  %s2334_s16 = smov %s2336_s18 }
 0x249   :  { %13 = sbr.rel (!%p11_p5) target bundleno = 2 (0x2), region = 74 }

</bundles_post_ra>
